<compile_context>
chip_gen: v7x
topology: tpu7x:2x2x1
jax: 0.10.0
libtpu: 0.0.40
codegen_flags: <defaults>
</compile_context>

<pallas_src>
import math

import jax
import jax.numpy as jnp
from jax.experimental import pallas as pl
from jax.experimental.pallas import tpu as pltpu


def _round_up(x, m):
    return (x + m - 1) // m * m


def _supports_bf16_eup():
    """bf16 exp only helps on chips with a bf16 EUP (v6e and newer)."""
    try:
        kind = jax.devices()[0].device_kind.lower()
    except Exception:
        return False
    for bad in ("v2", "v3", "v4", "v5 lite", "v5lite", "v5e"):
        if bad in kind:
            return False
    return True


def _vmem_limits():
    """(vmem_limit_bytes, block+temp footprint budget), generation-aware."""
    phys = None
    try:
        phys = int(getattr(pltpu.get_tpu_info(), "vmem_capacity_bytes"))
    except Exception:
        phys = None
    if phys is None:
        limit = 32 * 1024 * 1024                     # known-safe default
    else:
        # ~3/4 of physical VMEM: ~96 MiB on v5e/v6e (128 MiB), ~48 MiB on v7x.
        limit = max(32 * 1024 * 1024,
                    min((phys * 3) // 4, 100 * 1024 * 1024))
    budget = (limit * 7) // 10                       # headroom for compiler scratch
    return limit, budget


def _select_tiles(nH, L, S_eff, D, itemsize, w_itemsize, write_weights, budget):
    """Pick (Hblk, Ltile) so the full per-step VMEM footprint fits the budget."""
    sub = max(8, 32 // max(itemsize, 1))             # dtype-native sublane multiple
    lt = min(512, _round_up(L, sub))                 # 512 is sublane-aligned for all dtypes

    def footprint(h, l):
        q_blk = h * l * D * itemsize
        kv_blk = 2 * h * S_eff * D * itemsize        # K + V
        bias_blk = S_eff * 4
        out_blk = h * l * D * itemsize
        w_blk = h * l * S_eff * w_itemsize if write_weights else 0
        dma = 2 * (q_blk + kv_blk + bias_blk + out_blk + w_blk)   # double-buffered
        tmps = 3 * h * l * S_eff * 4 + h * l * D * 4              # f32 s/e/p + out acc
        return dma + tmps

    while True:
        hbest = 0
        for h in range(1, nH + 1):
            if footprint(h, lt) <= budget:
                hbest = h
        if hbest >= 1 or lt <= sub:
            break
        lt = max(sub, _round_up(lt // 2, sub))
    return max(1, hbest), lt


def _make_kernel(has_bias, write_weights, exp_dtype):
    def kernel(*refs):
        q_ref, k_ref, v_ref = refs[0], refs[1], refs[2]
        idx = 3
        b_ref = None
        if has_bias:
            b_ref = refs[idx]
            idx += 1
        out_ref = refs[idx]
        w_ref = refs[idx + 1] if write_weights else None

        q = q_ref[0]                                  # [Hblk, Ltile, D] (input dtype)
        k = k_ref[0]                                  # [Hblk, Sp,    D]
        v = v_ref[0]                                  # [Hblk, Sp,    D]

        d = q.shape[-1]
        # Fold 1/sqrt(D) into q: [Ltile, D] VPU work instead of scaling [L, Sp].
        qs = q * jnp.asarray(1.0 / math.sqrt(float(d)), q.dtype)

        # scores = Q K^T / sqrt(D): batched contraction over the last dim (no
        # explicit transpose), input-dtype operands, f32 accumulation on MXU.
        s = jnp.einsum("hld,hsd->hls", qs, k, preferred_element_type=jnp.float32)

        if b_ref is not None:
            s = s + b_ref[0]                          # [1, Sp] additive bias (0 / -1e8)

        # Numerically-stable softmax over keys.
        s_max = jnp.max(s, axis=-1, keepdims=True)
        e = jnp.exp((s - s_max).astype(exp_dtype))
        denom = jnp.sum(e.astype(jnp.float32), axis=-1, keepdims=True)

        # Dropout with p = 0.0 (module default) is the identity.

        if write_weights:
            # Exact normalization for the weights that are written back.
            p = e.astype(jnp.float32) / denom
            w_ref[0] = p.astype(w_ref.dtype)
            out = jnp.einsum("hls,hsd->hld", p.astype(v.dtype), v,
                             preferred_element_type=jnp.float32)
        else:
            # Deferred normalization: scale the [H, L, D] result, not the probs.
            out = jnp.einsum("hls,hsd->hld", e.astype(v.dtype), v,
                             preferred_element_type=jnp.float32)
            out = out * pl.reciprocal(denom, approx=True)
        out_ref[0] = out.astype(out_ref.dtype)

    return kernel


def dot_attention(Q, K, V, mask_out=None, *, return_weights=True):
    """Pallas implementation of DotAttention.forward (dropout=0, head_mask=None).

    Q: [B, nH, L, D]; K, V: [B, nH, S, D]; mask_out: [B, S] bool (True = masked).
    Returns (attention_out [B, nH, L, D], attention_weight [B, nH, L, S] or None).
    """
    B, nH, L, D = Q.shape
    S = K.shape[-2]
    itemsize = jnp.dtype(Q.dtype).itemsize

    vmem_limit, budget = _vmem_limits()

    # Key axis: lane-dense (multiple of 128) only when the [L, S] weights are
    # written back; otherwise keep S as-is (full-dim blocks are exempt from the
    # (8, 128) rule) and skip the K/V pad / weight slice entirely.
    Sp = _round_up(S, 128) if return_weights else S

    Hblk, Ltile = _select_tiles(nH, L, Sp, D, itemsize, itemsize,
                                return_weights, budget)
    Lp = _round_up(L, Ltile)
    nHp = _round_up(nH, Hblk)

    # ---- conditional padding (each pad is a full-tensor HBM round trip) -----
    Qp = Q
    if (nHp, Lp) != (nH, L):
        Qp = jnp.pad(Q, ((0, 0), (0, nHp - nH), (0, Lp - L), (0, 0)))
    Kp, Vp = K, V
    if (nHp, Sp) != (nH, S):
        Kp = jnp.pad(K, ((0, 0), (0, nHp - nH), (0, Sp - S), (0, 0)))
        Vp = jnp.pad(V, ((0, 0), (0, nHp - nH), (0, Sp - S), (0, 0)))

    # ---- additive mask bias (0 / -1e8), one row per batch (not per head) ----
    has_bias = (mask_out is not None) or (Sp != S)
    bias = None
    if has_bias:
        if mask_out is not None:
            bias = jnp.where(mask_out.reshape(B, S).astype(bool),
                             jnp.float32(-1.0e8), jnp.float32(0.0))
        else:
            bias = jnp.zeros((B, S), jnp.float32)
        if Sp != S:
            bias = jnp.pad(bias, ((0, 0), (0, Sp - S)), constant_values=-1.0e8)
        bias = bias.reshape(B, 1, Sp)

    # Query-tile axis last: K/V block indices are constant across it, so their
    # tiles are not re-fetched between query tiles of the same (batch, heads).
    grid = (B, nHp // Hblk, Lp // Ltile)

    in_specs = [
        pl.BlockSpec((1, Hblk, Ltile, D), lambda b, h, l: (b, h, l, 0)),
        pl.BlockSpec((1, Hblk, Sp, D), lambda b, h, l: (b, h, 0, 0)),
        pl.BlockSpec((1, Hblk, Sp, D), lambda b, h, l: (b, h, 0, 0)),
    ]
    args = [Qp, Kp, Vp]
    if has_bias:
        in_specs.append(pl.BlockSpec((1, 1, Sp), lambda b, h, l: (b, 0, 0)))
        args.append(bias)

    out_spec_o = pl.BlockSpec((1, Hblk, Ltile, D), lambda b, h, l: (b, h, l, 0))
    if return_weights:
        out_shape = (
            jax.ShapeDtypeStruct((B, nHp, Lp, D), Q.dtype),
            jax.ShapeDtypeStruct((B, nHp, Lp, Sp), Q.dtype),  # dtype parity with PyTorch
        )
        out_specs = [
            out_spec_o,
            pl.BlockSpec((1, Hblk, Ltile, Sp), lambda b, h, l: (b, h, l, 0)),
        ]
    else:
        out_shape = jax.ShapeDtypeStruct((B, nHp, Lp, D), Q.dtype)
        out_specs = out_spec_o

    exp_dtype = (jnp.bfloat16
                 if (Q.dtype == jnp.bfloat16 and _supports_bf16_eup())
                 else jnp.float32)
    kernel = _make_kernel(has_bias, return_weights, exp_dtype)

    result = pl.pallas_call(
        kernel,
        out_shape=out_shape,
        grid_spec=pltpu.PrefetchScalarGridSpec(
            num_scalar_prefetch=0,
            grid=grid,
            in_specs=in_specs,
            out_specs=out_specs,
        ),
        compiler_params=pltpu.CompilerParams(
            # Query-tile axis is "arbitrary": on v7x megacore, sharding it
            # would duplicate the (Hblk, Sp, D) K/V DMA across both cores.
            dimension_semantics=("parallel", "parallel", "arbitrary"),
            vmem_limit_bytes=vmem_limit,
        ),
    )(*args)

    if return_weights:
        out, w = result
        if (nHp, Lp) != (nH, L):
            out = out[:, :nH, :L, :]
        if (nHp, Lp, Sp) != (nH, L, S):
            w = w[:, :nH, :L, :S]
        return out, w
    out = result
    if (nHp, Lp) != (nH, L):
        out = out[:, :nH, :L, :]
    return out, None


def _reference(Q, K, V, mask_out):
    scale = math.sqrt(float(Q.shape[-1]))
    w = jnp.einsum("bhld,bhsd->bhls", Q, K) / scale
    if mask_out is not None:
        w = jnp.where(mask_out[:, None, None, :], -1.0e8, w)
    w = jax.nn.softmax(w, axis=-1)
    out = jnp.einsum("bhls,bhsd->bhld", w, V)
    return out, w


if __name__ == "__main__":
    B, nH, L, S, D = 2, 2, 8, 8, 32
    key = jax.random.PRNGKey(0)
    kq, kk, kv, km = jax.random.split(key, 4)

    Q = jax.random.normal(kq, (B, nH, L, D), dtype=jnp.float32)
    K = jax.random.normal(kk, (B, nH, S, D), dtype=jnp.float32)
    V = jax.random.normal(kv, (B, nH, S, D), dtype=jnp.float32)
    # Mask a few key positions per batch (True = masked); keep >=1 unmasked.
    mask_out = jax.random.bernoulli(km, p=0.25, shape=(B, S))
    mask_out = mask_out.at[:, 0].set(False)

    out, w = dot_attention(Q, K, V, mask_out)
    out = jax.block_until_ready(out)
    w = jax.block_until_ready(w)

    ref_out, ref_w = _reference(Q, K, V, mask_out)
    assert jnp.allclose(out, ref_out, atol=5e-3, rtol=5e-3)
    assert jnp.allclose(w, ref_w, atol=5e-3, rtol=5e-3)

    # attention_out-only fast path: no key padding, no weights writeback,
    # deferred (approx-reciprocal) normalization -> compare vs reference.
    out2, w2 = dot_attention(Q, K, V, mask_out, return_weights=False)
    out2 = jax.block_until_ready(out2)
    assert w2 is None
    assert jnp.allclose(out2, ref_out, atol=5e-3, rtol=5e-3)

    # No-mask path (only the internal key padding is masked).
    out3, w3 = dot_attention(Q, K, V, None)
    out3 = jax.block_until_ready(out3)
    ref_out3, ref_w3 = _reference(Q, K, V, None)
    assert jnp.allclose(out3, ref_out3, atol=5e-3, rtol=5e-3)
    assert jnp.allclose(w3, ref_w3, atol=5e-3, rtol=5e-3)

    print("KERNEL_OK")
</pallas_src>

<mosaic_0001>
module attributes {stable_mosaic.version = 11 : i64} {
  func.func @kernel(%arg0: i32, %arg1: i32, %arg2: i32, %arg3: memref<1x2x8x32xf32, #tpu.memory_space<vmem>>, %arg4: memref<1x2x128x32xf32, #tpu.memory_space<vmem>>, %arg5: memref<1x2x128x32xf32, #tpu.memory_space<vmem>>, %arg6: memref<1x1x128xf32, #tpu.memory_space<vmem>>, %arg7: memref<1x2x8x32xf32, #tpu.memory_space<vmem>>, %arg8: memref<1x2x8x128xf32, #tpu.memory_space<vmem>>) attributes {dimension_semantics = [#tpu.dimension_semantics<parallel>, #tpu.dimension_semantics<parallel>, #tpu.dimension_semantics<arbitrary>], iteration_bounds = array<i64: 2, 1, 1>, scalar_prefetch = 0 : i64, scratch_operands = 0 : i64, tpu.core_type = #tpu.core_type<tc>, window_params = [{transform_indices = @transform_0, window_bounds = array<i64: 1, 2, 8, 32>}, {transform_indices = @transform_1, window_bounds = array<i64: 1, 2, 128, 32>}, {transform_indices = @transform_2, window_bounds = array<i64: 1, 2, 128, 32>}, {transform_indices = @transform_3, window_bounds = array<i64: 1, 1, 128>}, {transform_indices = @transform_4, window_bounds = array<i64: 1, 2, 8, 32>}, {transform_indices = @transform_5, window_bounds = array<i64: 1, 2, 8, 128>}]} {
    %c0 = arith.constant 0 : index
    %c0_0 = arith.constant 0 : index
    %c0_1 = arith.constant 0 : index
    %c0_2 = arith.constant 0 : index
    %0 = vector.load %arg3[%c0, %c0_0, %c0_1, %c0_2] : memref<1x2x8x32xf32, #tpu.memory_space<vmem>>, vector<1x2x8x32xf32>
    %1 = vector.shape_cast %0 : vector<1x2x8x32xf32> to vector<2x8x32xf32>
    %c0_3 = arith.constant 0 : index
    %c0_4 = arith.constant 0 : index
    %c0_5 = arith.constant 0 : index
    %c0_6 = arith.constant 0 : index
    %2 = vector.load %arg4[%c0_3, %c0_4, %c0_5, %c0_6] : memref<1x2x128x32xf32, #tpu.memory_space<vmem>>, vector<1x2x128x32xf32>
    %3 = vector.shape_cast %2 : vector<1x2x128x32xf32> to vector<2x128x32xf32>
    %c0_7 = arith.constant 0 : index
    %c0_8 = arith.constant 0 : index
    %c0_9 = arith.constant 0 : index
    %c0_10 = arith.constant 0 : index
    %4 = vector.load %arg5[%c0_7, %c0_8, %c0_9, %c0_10] : memref<1x2x128x32xf32, #tpu.memory_space<vmem>>, vector<1x2x128x32xf32>
    %5 = vector.shape_cast %4 : vector<1x2x128x32xf32> to vector<2x128x32xf32>
    %cst = arith.constant 0.176776692 : f32
    %6 = vector.broadcast %cst : f32 to vector<2x8x32xf32>
    %7 = arith.mulf %1, %6 : vector<2x8x32xf32>
    "tpu.trace_start"() <{level = 10 : i32, message = "hld,hsd->hls"}> : () -> ()
    %cst_11 = arith.constant dense<0.000000e+00> : vector<2x8x128xf32>
    %8 = tpu.matmul %7, %3, %cst_11 {dimension_numbers = #tpu.dot_dimension_numbers<[2], [2], [1], [1], [0, 0, 0, 1, 1, 1], [0], [0]>} : vector<2x8x32xf32>, vector<2x128x32xf32>, vector<2x8x128xf32> -> vector<2x8x128xf32>
    "tpu.trace_stop"() : () -> ()
    %c0_12 = arith.constant 0 : index
    %c0_13 = arith.constant 0 : index
    %c0_14 = arith.constant 0 : index
    %9 = vector.load %arg6[%c0_12, %c0_13, %c0_14] : memref<1x1x128xf32, #tpu.memory_space<vmem>>, vector<1x1x128xf32>
    %10 = vector.shape_cast %9 : vector<1x1x128xf32> to vector<1x128xf32>
    %11 = vector.shape_cast %10 : vector<1x128xf32> to vector<1x1x128xf32>
    %12 = vector.broadcast %11 : vector<1x1x128xf32> to vector<2x8x128xf32>
    %13 = arith.addf %8, %12 : vector<2x8x128xf32>
    %cst_15 = arith.constant dense<0xFF800000> : vector<2x8xf32>
    %14 = vector.multi_reduction <maximumf>, %13, %cst_15 [2] : vector<2x8x128xf32> to vector<2x8xf32>
    %15 = vector.shape_cast %14 : vector<2x8xf32> to vector<2x8x1xf32>
    %16 = vector.broadcast %15 : vector<2x8x1xf32> to vector<2x8x128xf32>
    %17 = arith.subf %13, %16 : vector<2x8x128xf32>
    %18 = math.exp %17 : vector<2x8x128xf32>
    %cst_16 = arith.constant dense<0.000000e+00> : vector<2x8xf32>
    %19 = vector.multi_reduction <add>, %18, %cst_16 [2] : vector<2x8x128xf32> to vector<2x8xf32>
    %20 = vector.shape_cast %19 : vector<2x8xf32> to vector<2x8x1xf32>
    %21 = vector.broadcast %20 : vector<2x8x1xf32> to vector<2x8x128xf32>
    %22 = arith.divf %18, %21 : vector<2x8x128xf32>
    %c0_17 = arith.constant 0 : index
    %c0_18 = arith.constant 0 : index
    %c0_19 = arith.constant 0 : index
    %c0_20 = arith.constant 0 : index
    %23 = vector.load %arg8[%c0_17, %c0_18, %c0_19, %c0_20] : memref<1x2x8x128xf32, #tpu.memory_space<vmem>>, vector<1x2x8x128xf32>
    %24 = vector.shape_cast %23 : vector<1x2x8x128xf32> to vector<2x8x128xf32>
    %25 = vector.shape_cast %22 : vector<2x8x128xf32> to vector<1x2x8x128xf32>
    tpu.vector_store %arg8[%c0_17, %c0_18, %c0_19, %c0_20], %25 {strides = array<i32>} : memref<1x2x8x128xf32, #tpu.memory_space<vmem>>, vector<1x2x8x128xf32>,
    "tpu.trace_start"() <{level = 10 : i32, message = "hls,hsd->hld"}> : () -> ()
    %cst_21 = arith.constant dense<0.000000e+00> : vector<2x8x32xf32>
    %26 = tpu.matmul %22, %5, %cst_21 {dimension_numbers = #tpu.dot_dimension_numbers<[2], [1], [1], [2], [0, 0, 0, 1, 1, 2], [0], [0]>} : vector<2x8x128xf32>, vector<2x128x32xf32>, vector<2x8x32xf32> -> vector<2x8x32xf32>
    "tpu.trace_stop"() : () -> ()
    %c0_22 = arith.constant 0 : index
    %c0_23 = arith.constant 0 : index
    %c0_24 = arith.constant 0 : index
    %c0_25 = arith.constant 0 : index
    %27 = vector.load %arg7[%c0_22, %c0_23, %c0_24, %c0_25] : memref<1x2x8x32xf32, #tpu.memory_space<vmem>>, vector<1x2x8x32xf32>
    %28 = vector.shape_cast %27 : vector<1x2x8x32xf32> to vector<2x8x32xf32>
    %29 = vector.shape_cast %26 : vector<2x8x32xf32> to vector<1x2x8x32xf32>
    tpu.vector_store %arg7[%c0_22, %c0_23, %c0_24, %c0_25], %29 {strides = array<i32>} : memref<1x2x8x32xf32, #tpu.memory_space<vmem>>, vector<1x2x8x32xf32>,
    return
  }
  func.func @transform_0(%arg0: i32, %arg1: i32, %arg2: i32) -> (i32, i32, i32, i32) {
    %c0_i32 = arith.constant 0 : i32
    %c0_i32_0 = arith.constant 0 : i32
    return %arg0, %arg1, %arg2, %c0_i32 : i32, i32, i32, i32
  }
  func.func @transform_1(%arg0: i32, %arg1: i32, %arg2: i32) -> (i32, i32, i32, i32) {
    %c0_i32 = arith.constant 0 : i32
    %c0_i32_0 = arith.constant 0 : i32
    %c0_i32_1 = arith.constant 0 : i32
    return %arg0, %arg1, %c0_i32, %c0_i32_0 : i32, i32, i32, i32
  }
  func.func @transform_2(%arg0: i32, %arg1: i32, %arg2: i32) -> (i32, i32, i32, i32) {
    %c0_i32 = arith.constant 0 : i32
    %c0_i32_0 = arith.constant 0 : i32
    %c0_i32_1 = arith.constant 0 : i32
    return %arg0, %arg1, %c0_i32, %c0_i32_0 : i32, i32, i32, i32
  }
  func.func @transform_3(%arg0: i32, %arg1: i32, %arg2: i32) -> (i32, i32, i32) {
    %c0_i32 = arith.constant 0 : i32
    %c0_i32_0 = arith.constant 0 : i32
    %c0_i32_1 = arith.constant 0 : i32
    return %arg0, %c0_i32, %c0_i32_0 : i32, i32, i32
  }
  func.func @transform_4(%arg0: i32, %arg1: i32, %arg2: i32) -> (i32, i32, i32, i32) {
    %c0_i32 = arith.constant 0 : i32
    %c0_i32_0 = arith.constant 0 : i32
    return %arg0, %arg1, %arg2, %c0_i32 : i32, i32, i32, i32
  }
  func.func @transform_5(%arg0: i32, %arg1: i32, %arg2: i32) -> (i32, i32, i32, i32) {
    %c0_i32 = arith.constant 0 : i32
    %c0_i32_0 = arith.constant 0 : i32
    return %arg0, %arg1, %arg2, %c0_i32 : i32, i32, i32, i32
  }
}

</mosaic_0001>

<bundles_post_ra>
// kernel: tpu_custom_call.1
= control target key start
LH: loop header
LB: loop body
LE: loop exit
PB: predicated region body
PF: predicated region fallthrough
CT: control target
= control target key end

     0   :  { %11 = vsyncpa [#allocation3], 0  ;;  %s2010_s0 = inlined_call_operand.vmem [shape: f32[2,2,8,32], index: 0, kind: input, shape index: {}]   ;;  %s2011_s1 = inlined_call_operand.vmem [shape: f32[2,2,128,32], index: 1, kind: input, shape index: {}]   ;;  %s2012_s2 = inlined_call_operand.vmem [shape: f32[2,2,128,32], index: 2, kind: input, shape index: {}]   ;;  %s2013_s3 = inlined_call_operand.vmem [shape: f32[2,1,128], index: 3, kind: input, shape index: {}]   ;;  %s2014_s4 = inlined_call_operand.hbm [shape: f32[2,2,8,32], index: 4, kind: output, shape index: {0}]   ;;  %s2015_s5 = inlined_call_operand.hbm [shape: f32[2,2,8,128], index: 5, kind: output, shape index: {1}]  }
   0x1   :  { %13 = vsyncpa [#allocation3 + $0x1], 0 }
   0x2   :  { %14 = vsyncpa [#allocation5], 0 }
   0x3   :  { %16 = vsyncpa [#allocation5 + $0x1], 0  ;;  %s1679_s18 = smov 0   ;;  %s1681_s19 = smov 0  }
   0x4   :  { %s1683_s20 = smov 0   ;;  %s1685_s21 = smov 0  }
   0x5   :  { %s1687_s22 = smov 0   ;;  %s1689_s23 = smov 0  }
   0x6 LB: > { %s1076_s24 = sadd.s32 4294967295, %s1640_s23   ;;  %s1077_s25 = sadd.s32 4294967294, %s1640_s23   ;;  %s1640_s23 = sphi %s1689_s23, %s22_s23   ;;  %s1636_s22 = sphi %s1687_s22, %s2024_s22   ;;  %s1632_s21 = sphi %s1685_s21, %s2023_s21   ;;  %s1628_s20 = sphi %s1683_s20, %s2022_s20   ;;  %s1624_s19 = sphi %s1681_s19, %s2021_s19   ;;  %s1620_s18 = sphi %s1679_s18, %s2020_s18  }
   0x7   : > { %s41_s26 = sadd.s32 1, %s1636_s22  ;;  %s164_s27 = sadd.s32 1, %s1628_s20 }
   0x8   : > { %p43_p0 = scmp.ge.s32.totalorder %s41_s26, 2  ;;  %p174_p1 = scmp.ne.s32.totalorder %s1628_s20, %s1624_s19 }
   0x9   : > { %p175_p2 = scmp.eq.s32.totalorder %s1076_s24, 1  ;;  %p180_p3 = scmp.ne.s32.totalorder %s1624_s19, %s1620_s18 }
   0xa   : > { %s2026_s26 = smov (%p43_p0, %s41_s26), 0  ;;  %p181_p5 = scmp.eq.s32.totalorder %s1077_s25, 1 }
   0xb   : > { %p1719_p4 = por %p175_p2, %p174_p1  ;;  %s157_s29 = ssub.s32 %s1636_s22, %s2026_s26 }
   0xc   : > { %p1080_p6 = scmp.ge.s32.totalorder %s1640_s23, 1  ;;  %p162_p7 = scmp.eq.s32.totalorder %s157_s29, 0 }
   0xd   : > { %p1726_p8 = por %p181_p5, %p180_p3  ;;  %p279_p9 = scmp.lt.s32.totalorder %s1640_s23, 3 }
   0xe   : > { %s1732_s6 = scalar_select %p162_p7, %s1628_s20, %s164_s27  }
   0xf   : > { %p280_p10 = pnand %p1080_p6, %p279_p9 }
  0x10   : > { %p343_p11 = scmp.lt.s32.totalorder (!%p280_p10), %s1632_s21, 1  ;;  %v1642_v0 = vmov (!%p280_p10), 0.0|0.0   ;;  %vm457_vm0 = vcmask (!%p280_p10), 261120   ;;  %vm1643_vm1 = vmmov (!%p280_p10), 0   ;;  %v1644_v1 = vmov (!%p280_p10), 0.0   ;;  %s1645_s17 = smov (!%p280_p10), [#allocation4]  }
  0x11   : > { %283 = sbr.rel (%p280_p10) target bundleno = 850 (0x352), region = 36  ;;  %1345 = vmatprep.subr.bf16.mxu0 (!%p280_p10), %v1642_v0  ;;  %1377 = vmatprep.subr.bf16.mxu1 (!%p280_p10), %v1642_v0  ;;  %vm1754_vm2 = vmpackc.low (!%p280_p10), %vm457_vm0, %vm457_vm0 }
  0x12   : > { %1237 = vmatprep.mubr.msk.f32.mxu0 (!%p280_p10), %vm1643_vm1, %v1644_v1  ;;  %1272 = vmatprep.mubr.msk.f32.mxu1 (!%p280_p10), %vm1643_vm1, %v1644_v1 }
  0x18   : > { %s1738_s7 = scalar_select %p343_p11, %s1632_s21, 1 }
  0x1a   : > { %s1133_s8 = sshll.u32 %s1738_s7, 8  ;;  %s1132_s12 = sshll.u32 %s1738_s7, 4 }
  0x1b   : > { %s1750_s11 = scalar_lea.vmem %s2011_s1, %s1133_s8  ;;  %s353_s15 = scalar_lea.vmem %s2010_s0, %s1132_s12 }
  0x1c   : > { %v384_v3 = vld [vmem:[%s1750_s11] sm:$0xff]  ;;  %v385_v4 = vld [vmem:[%s1750_s11 + $0x8] sm:$0xff]  ;;  %v386_v9 = vld [vmem:[%s1750_s11 + $0x10] sm:$0xff]  ;;  %s379_s24 = scalar_lea.vmem %s2013_s3, %s1738_s7  ;;  %s1857_s29 = scalar_lea.vmem %s2012_s2, %s1133_s8 }
  0x1d   : > { %v400_v5 = vld [vmem:[%s1750_s11 + $0x80] sm:$0xff]  ;;  %v1346_v6 = vpack.c.bf16 %v385_v4, %v384_v3  ;;  %v401_v7 = vld [vmem:[%s1750_s11 + $0x88] sm:$0xff]  ;;  %v387_v10 = vld [vmem:[%s1750_s11 + $0x18] sm:$0xff]  ;;  %s1906_s7 = sand.u32 1, %s1624_s19  }
  0x1e   : > { %v1378_v8 = vpack.c.bf16 %v401_v7, %v400_v5  ;;  %v402_v11 = vld [vmem:[%s1750_s11 + $0x90] sm:$0xff]  ;;  %v403_v12 = vld [vmem:[%s1750_s11 + $0x98] sm:$0xff]  ;;  %v1350_v13 = vpack.c.bf16 %v387_v10, %v386_v9  ;;  %v388_v15 = vld [vmem:[%s1750_s11 + $0x20] sm:$0xff]  ;;  %s1081_s8 = sshll.u32 %s1906_s7, 4 }
  0x1f   : > { %1348 = vmatpush3.bf16.xpose.msk.msra.mxu0 %vm1754_vm2, %v1346_v6  ;;  %v1382_v14 = vpack.c.bf16 %v403_v12, %v402_v11  ;;  %v389_v16 = vld [vmem:[%s1750_s11 + $0x28] sm:$0xff]  ;;  %v404_v17 = vld [vmem:[%s1750_s11 + $0xa0] sm:$0xff]  ;;  %v390_v21 = vld [vmem:[%s1750_s11 + $0x30] sm:$0xff]  ;;  %s341_s9 = scalar_lea.vmem [#allocation4], %s1081_s8 }
  0x20   : > { %1380 = vmatpush3.bf16.xpose.msk.msra.mxu1 %vm1754_vm2, %v1378_v8  ;;  %1349 = vmatprep.subr.bf16.mxu0 %v1642_v0  ;;  %v405_v18 = vld [vmem:[%s1750_s11 + $0xa8] sm:$0xff]  ;;  %v1354_v19 = vpack.c.bf16 %v389_v16, %v388_v15  ;;  %v391_v22 = vld [vmem:[%s1750_s11 + $0x38] sm:$0xff]  ;;  %v406_v23 = vld [vmem:[%s1750_s11 + $0xb0] sm:$0xff]  ;;  %s903_s10 = sshll.u32 %s341_s9, 4  ;;  %s1911_s10 = int_to_ptr.vmem [resolvable:$true] %s903_s10 }
  0x21   : > { %1381 = vmatprep.subr.bf16.mxu1 %v1642_v0  ;;  %v1386_v20 = vpack.c.bf16 %v405_v18, %v404_v17  ;;  %v407_v24 = vld [vmem:[%s1750_s11 + $0xb8] sm:$0xff]  ;;  %v1358_v25 = vpack.c.bf16 %v391_v22, %v390_v21  ;;  %v392_v27 = vld [vmem:[%s1750_s11 + $0x40] sm:$0xff]  ;;  %v393_v28 = vld [vmem:[%s1750_s11 + $0x48] sm:$0xff]  ;;  %s1530_s16 = scalar_lea.vmem %s1911_s10, 256 }
  0x22   : > { %v1390_v26 = vpack.c.bf16 %v407_v24, %v406_v23  ;;  %v408_v29 = vld [vmem:[%s1750_s11 + $0xc0] sm:$0xff]  ;;  %v409_v30 = vld [vmem:[%s1750_s11 + $0xc8] sm:$0xff]  ;;  %v1362_v31 = vpack.c.bf16 %v393_v28, %v392_v27  ;;  %v394_v33 = vld [vmem:[%s1750_s11 + $0x50] sm:$0xff]  ;;  %p1531_p12 = scmp.ne.s32.totalorder %s1911_s10, %s1530_s16 }
  0x23   : > { %v1394_v32 = vpack.c.bf16 %v409_v30, %v408_v29  ;;  %v395_v34 = vld [vmem:[%s1750_s11 + $0x58] sm:$0xff]  ;;  %v410_v35 = vld [vmem:[%s1750_s11 + $0xd0] sm:$0xff]  ;;  %v396_v39 = vld [vmem:[%s1750_s11 + $0x60] sm:$0xff] }
  0x24   : > { %v411_v36 = vld [vmem:[%s1750_s11 + $0xd8] sm:$0xff]  ;;  %v1366_v37 = vpack.c.bf16 %v395_v34, %v394_v33  ;;  %v397_v40 = vld [vmem:[%s1750_s11 + $0x68] sm:$0xff]  ;;  %v412_v41 = vld [vmem:[%s1750_s11 + $0xe0] sm:$0xff]  ;;  %p1532_p13 = pnand %p1531_p12, %p1719_p4 }
  0x25   : > { %v1398_v38 = vpack.c.bf16 %v411_v36, %v410_v35  ;;  %v413_v42 = vld [vmem:[%s1750_s11 + $0xe8] sm:$0xff]  ;;  %v1370_v43 = vpack.c.bf16 %v397_v40, %v396_v39  ;;  %v398_v45 = vld [vmem:[%s1750_s11 + $0x70] sm:$0xff]  ;;  %v399_v46 = vld [vmem:[%s1750_s11 + $0x78] sm:$0xff] }
  0x26   : > { %v1402_v44 = vpack.c.bf16 %v413_v42, %v412_v41  ;;  %v414_v47 = vld [vmem:[%s1750_s11 + $0xf0] sm:$0xff]  ;;  %v415_v48 = vld [vmem:[%s1750_s11 + $0xf8] sm:$0xff]  ;;  %v1374_v49 = vpack.c.bf16 %v399_v46, %v398_v45  ;;  %v382_v51 = vld [vmem:[%s353_s15] sm:$0xff]  ;;  %s1135_s11 = sshll.u32 %s1632_s21, 8  ;;  %p1533_p0 = pneg %p1532_p13 }
  0x27   : > { %1352 = vmatpush3.bf16.xpose.msk.msra.mxu0 %vm1754_vm2, %v1350_v13  ;;  %v1406_v50 = vpack.c.bf16 %v415_v48, %v414_v47  ;;  %v383_v52 = vld [vmem:[%s353_s15 + $0x8] sm:$0xff]  ;;  %v448_v53 = vmul.f32 0.17677669, %v382_v51  ;;  %v1089_v55 = vld [vmem:[%s379_s24] ss:$0 sm:$0xff]  ;;  %v419_v3 = vld [vmem:[%s1857_s29 + $0x18] sm:$0xff]  ;;  %s1919_s14 = scalar_lea.hbm %s2015_s5, %s1135_s11 }
  0x28   : > { %1384 = vmatpush3.bf16.xpose.msk.msra.mxu1 %vm1754_vm2, %v1382_v14  ;;  %1353 = vmatprep.subr.bf16.mxu0 %v1642_v0  ;;  %v449_v54 = vmul.f32 0.17677669, %v383_v52  ;;  %v416_v62 = vld [vmem:[%s1857_s29] sm:$0xff]  ;;  %v417_v63 = vld [vmem:[%s1857_s29 + $0x8] sm:$0xff]  ;;  %v434_v7 = vld [vmem:[%s1857_s29 + $0x90] sm:$0xff]  ;;  %s868_s15 = scalar_lea.sflag [#allocation5], %s1906_s7 }
  0x29   : > { %1385 = vmatprep.subr.bf16.mxu1 %v1642_v0  ;;  %v1410_v2 = vpack.c.bf16 %v417_v63, %v416_v62  ;;  %v432_v4 = vld [vmem:[%s1857_s29 + $0x80] sm:$0xff]  ;;  %v433_v5 = vld [vmem:[%s1857_s29 + $0x88] sm:$0xff]  ;;  %v435_v9 = vld [vmem:[%s1857_s29 + $0x98] sm:$0xff]  ;;  %s1534_s24 = sshll.u32 %s1645_s17, 4  ;;  %s1535_s24 = int_to_ptr.vmem [resolvable:$false] %s1534_s24 }
  0x2a   : > { %v1434_v6 = vpack.c.bf16 %v433_v5, %v432_v4  ;;  %v420_v10 = vld [vmem:[%s1857_s29 + $0x20] sm:$0xff]  ;;  %v421_v11 = vld [vmem:[%s1857_s29 + $0x28] sm:$0xff]  ;;  %v1437_v12 = vpack.c.bf16 %v435_v9, %v434_v7  ;;  %v422_v16 = vld [vmem:[%s1857_s29 + $0x30] sm:$0xff]  ;;  %s1536_s25 = scalar_lea.vmem %s1535_s24, 512  ;;  %p1537_p1 = scmp.lt.s32.totalorder %s1911_s10, %s1535_s24 }
  0x2b   : > { %v436_v13 = vld [vmem:[%s1857_s29 + $0xa0] sm:$0xff]  ;;  %v437_v14 = vld [vmem:[%s1857_s29 + $0xa8] sm:$0xff]  ;;  %v1416_v15 = vpack.c.bf16 %v421_v11, %v420_v10  ;;  %v423_v17 = vld [vmem:[%s1857_s29 + $0x38] sm:$0xff]  ;;  %p1538_p2 = scmp.lt.s32.totalorder %s1536_s25, %s1530_s16 }
  0x2c   : > { %v1440_v18 = vpack.c.bf16 %v437_v14, %v436_v13  ;;  %v1419_v21 = vpack.c.bf16 %v423_v17, %v422_v16  ;;  %v424_v22 = vld [vmem:[%s1857_s29 + $0x40] sm:$0xff]  ;;  %v425_v23 = vld [vmem:[%s1857_s29 + $0x48] sm:$0xff]  ;;  %v426_v34 = vld [vmem:[%s1857_s29 + $0x50] sm:$0xff] }
  0x2d   : > { %v427_v35 = vld [vmem:[%s1857_s29 + $0x58] sm:$0xff]  ;;  %v440_v36 = vld [vmem:[%s1857_s29 + $0xc0] sm:$0xff]  ;;  %v429_v41 = vld [vmem:[%s1857_s29 + $0x68] sm:$0xff]  ;;  %p1539_p3 = por %p1538_p2, %p1537_p1 }
  0x2e   : > { %v428_v40 = vld [vmem:[%s1857_s29 + $0x60] sm:$0xff]  ;;  %v442_v42 = vld [vmem:[%s1857_s29 + $0xd0] sm:$0xff]  ;;  %v431_v46 = vld [vmem:[%s1857_s29 + $0x78] sm:$0xff] }
  0x2f   : > { %1356 = vmatpush3.bf16.xpose.msk.msra.mxu0 %vm1754_vm2, %v1354_v19  ;;  %v438_v19 = vld [vmem:[%s1857_s29 + $0xb0] sm:$0xff]  ;;  %v444_v48 = vld [vmem:[%s1857_s29 + $0xe0] sm:$0xff]  ;;  %p1540_p5 = pnand %p1539_p3, %p1533_p0 }
  0x30   : > { %1388 = vmatpush3.bf16.xpose.msk.msra.mxu1 %vm1754_vm2, %v1386_v20  ;;  %1357 = vmatprep.subr.bf16.mxu0 %v1642_v0  ;;  %v439_v20 = vld [vmem:[%s1857_s29 + $0xb8] sm:$0xff]  ;;  %v430_v45 = vld [vmem:[%s1857_s29 + $0x70] sm:$0xff] }
  0x31   : > { %1389 = vmatprep.subr.bf16.mxu1 %v1642_v0  ;;  %v1443_v24 = vpack.c.bf16 %v439_v20, %v438_v19  ;;  %v446_v52 = vld [vmem:[%s1857_s29 + $0xf0] sm:$0xff] }
  0x37   : > { %1360 = vmatpush3.bf16.xpose.msk.msra.mxu0 %vm1754_vm2, %v1358_v25  ;;  %v1422_v25 = vpack.c.bf16 %v425_v23, %v424_v22 }
  0x38   : > { %1392 = vmatpush3.bf16.xpose.msk.msra.mxu1 %vm1754_vm2, %v1390_v26  ;;  %1361 = vmatprep.subr.bf16.mxu0 %v1642_v0 }
  0x39   : > { %1393 = vmatprep.subr.bf16.mxu1 %v1642_v0 }
  0x3f   : > { %1364 = vmatpush3.bf16.xpose.msk.msra.mxu0 %vm1754_vm2, %v1362_v31 }
  0x40   : > { %1396 = vmatpush3.bf16.xpose.msk.msra.mxu1 %vm1754_vm2, %v1394_v32  ;;  %1365 = vmatprep.subr.bf16.mxu0 %v1642_v0 }
  0x41   : > { %1397 = vmatprep.subr.bf16.mxu1 %v1642_v0 }
  0x47   : > { %1368 = vmatpush3.bf16.xpose.msk.msra.mxu0 %vm1754_vm2, %v1366_v37  ;;  %v1425_v37 = vpack.c.bf16 %v427_v35, %v426_v34 }
  0x48   : > { %1400 = vmatpush3.bf16.xpose.msk.msra.mxu1 %vm1754_vm2, %v1398_v38  ;;  %1369 = vmatprep.subr.bf16.mxu0 %v1642_v0  ;;  %v441_v38 = vld [vmem:[%s1857_s29 + $0xc8] sm:$0xff] }
  0x49   : > { %1401 = vmatprep.subr.bf16.mxu1 %v1642_v0  ;;  %v1446_v39 = vpack.c.bf16 %v441_v38, %v440_v36 }
  0x4f   : > { %1372 = vmatpush3.bf16.xpose.msk.msra.mxu0 %vm1754_vm2, %v1370_v43  ;;  %v1428_v43 = vpack.c.bf16 %v429_v41, %v428_v40 }
  0x50   : > { %1404 = vmatpush3.bf16.xpose.msk.msra.mxu1 %vm1754_vm2, %v1402_v44  ;;  %1373 = vmatprep.subr.bf16.mxu0 %v1642_v0  ;;  %v443_v44 = vld [vmem:[%s1857_s29 + $0xd8] sm:$0xff] }
  0x51   : > { %1405 = vmatprep.subr.bf16.mxu1 %v1642_v0  ;;  %v1449_v47 = vpack.c.bf16 %v443_v44, %v442_v42 }
  0x57   : > { %1376 = vmatpush3.bf16.xpose.msk.msra.mxu0 %vm1754_vm2, %v1374_v49  ;;  %v445_v49 = vld [vmem:[%s1857_s29 + $0xe8] sm:$0xff] }
  0x58   : > { %1408 = vmatpush3.bf16.xpose.msk.msra.mxu1 %vm1754_vm2, %v1406_v50  ;;  %1409 = vmatprep.subr.bf16.mxu0 %v1642_v0  ;;  %v1431_v50 = vpack.c.bf16 %v431_v46, %v430_v45  ;;  %v1452_v51 = vpack.c.bf16 %v445_v49, %v444_v48 }
  0x59   : > { %1433 = vmatprep.subr.bf16.mxu1 %v1642_v0 }
  0x5e   : > { %1238 = vmatmul.mubr.msk.f32.vlgmr.msra.gmra.mrb[0].mxu0 %vm457_vm0, %v448_v53  ;;  %v447_v53 = vld [vmem:[%s1857_s29 + $0xf8] sm:$0xff] }
  0x5f   : > { %1273 = vmatmul.mubr.msk.f32.vlgmr.msra.gmra.mrb[0].mxu1 %vm457_vm0, %v449_v54  ;;  %1307 = vmatprep.mubr.msk.f32.mxu0 %vm1643_vm1, %v1644_v1  ;;  %v1455_v54 = vpack.c.bf16 %v447_v53, %v446_v52 }
  0x60   : > { %1342 = vmatprep.mubr.msk.f32.mxu1 %vm1643_vm1, %v1644_v1  ;;  %v418_v1 = vld [vmem:[%s1857_s29 + $0x10] sm:$0xff]  ;;  %1411 = vmatpush3.bf16.msra.mxu0 %v1410_v2 }
  0x61   : > { %v1413_v8 = vpack.c.bf16 %v419_v3, %v418_v1  ;;  %1412 = vmatprep.subr.bf16.mxu0 %v1642_v0  ;;  %1435 = vmatpush3.bf16.msra.mxu1 %v1434_v6 }
  0x62   : > { %1436 = vmatprep.subr.bf16.mxu1 %v1642_v0 }
  0x64   : > { %1414 = vmatpush3.bf16.msra.mxu0 %v1413_v8 }
  0x65   : > { %1415 = vmatprep.subr.bf16.mxu0 %v1642_v0  ;;  %1438 = vmatpush3.bf16.msra.mxu1 %v1437_v12 }
  0x66   : > { %1439 = vmatprep.subr.bf16.mxu1 %v1642_v0 }
  0x68   : > { %1417 = vmatpush3.bf16.msra.mxu0 %v1416_v15 }
  0x69   : > { %1418 = vmatprep.subr.bf16.mxu0 %v1642_v0  ;;  %1441 = vmatpush3.bf16.msra.mxu1 %v1440_v18 }
  0x6a   : > { %1442 = vmatprep.subr.bf16.mxu1 %v1642_v0 }
  0x6c   : > { %1420 = vmatpush3.bf16.msra.mxu0 %v1419_v21 }
  0x6d   : > { %1421 = vmatprep.subr.bf16.mxu0 %v1642_v0  ;;  %1444 = vmatpush3.bf16.msra.mxu1 %v1443_v24 }
  0x6e   : > { %1445 = vmatprep.subr.bf16.mxu1 %v1642_v0 }
  0x70   : > { %1423 = vmatpush3.bf16.msra.mxu0 %v1422_v25 }
  0x71   : > { %1424 = vmatprep.subr.bf16.mxu0 %v1642_v0  ;;  %1447 = vmatpush3.bf16.msra.mxu1 %v1446_v39 }
  0x72   : > { %1448 = vmatprep.subr.bf16.mxu1 %v1642_v0 }
  0x74   : > { %1426 = vmatpush3.bf16.msra.mxu0 %v1425_v37 }
  0x75   : > { %1427 = vmatprep.subr.bf16.mxu0 %v1642_v0  ;;  %1450 = vmatpush3.bf16.msra.mxu1 %v1449_v47 }
  0x76   : > { %1451 = vmatprep.subr.bf16.mxu1 %v1642_v0 }
  0x78   : > { %1429 = vmatpush3.bf16.msra.mxu0 %v1428_v43 }
  0x79   : > { %1430 = vmatprep.subr.bf16.mxu0 %v1642_v0  ;;  %1453 = vmatpush3.bf16.msra.mxu1 %v1452_v51 }
  0x7a   : > { %1454 = vmatprep.subr.bf16.mxu1 %v1642_v0 }
  0x7c   : > { %1432 = vmatpush3.bf16.msra.mxu0 %v1431_v50 }
  0x7d   : > { %1456 = vmatpush3.bf16.msra.mxu1 %v1455_v54 }
 0x131   : > { %v575_v56 = vpop.f32.mrb[0].mxu0 }
 0x132   : > { %v576_v57 = vadd.f32 %v1089_v55, %v575_v56  ;;  %v1239_v58 = vpop.f32.mrb[1].mxu0  ;;  %v696_v59 = vpop.f32.mrb[0].mxu1 }
 0x133   : > { %v697_v60 = vadd.f32 %v1089_v55, %v696_v59  ;;  %v1274_v61 = vpop.f32.mrb[1].mxu1 }
 0x134   : > { %700 = vmax.xlane.f32.xlu0 %v576_v57 }
 0x138   : > { %702 = vmax.xlane.f32.xlu0 %v697_v60 }
 0x1c1   : > { %v701_v26 = vpop.xlane.xlu0 %700 }
 0x1c2   : > { %v704_v27 = vsub.f32 %v576_v57, %v701_v26 }
 0x1c4   : > { %v706_v28 = vmul.f32 1.442695, %v704_v27 }
 0x1c5   : > { %v703_v29 = vpop.xlane.xlu0 %702 }
 0x1c6   : > { %1522 = vpow2.f32 %v706_v28  ;;  %v705_v30 = vsub.f32 %v697_v60, %v703_v29 }
 0x1c8   : > { %v708_v31 = vmul.f32 1.442695, %v705_v30 }
 0x1ca   : > { %1524 = vpow2.f32 %v708_v31 }
 0x1d0   : > { %v1523_v32 = vpop.eup %1522 }
 0x1d1   : > { %710 = vadd.xlane.f32.xlu1 %v1523_v32 }
 0x1d4   : > { %v1525_v33 = vpop.eup %1524 }
 0x1d5   : > { %712 = vadd.xlane.f32.xlu1 %v1525_v33 }
 0x25e   : > { %v711_v55 = vpop.xlane.xlu1 %710 }
 0x25f   : > { %1526 = vrcp.f32 %v711_v55 }
 0x262   : > { %v713_v56 = vpop.xlane.xlu1 %712 }
 0x263   : > { %1528 = vrcp.f32 %v713_v56 }
 0x269   : > { %v1527_v57 = vpop.eup %1526 }
 0x26a   : > { %v715_v58 = vmul.f32 %v1527_v57, %v1523_v32 }
 0x26c   : > { %1308 = vmatmul.mubr.f32.vlgmr.msra.gmra.mrb[2].mxu0 %v715_v58  ;;  %718 = vst [vmem:[%s341_s9] sm:$0xff] %v715_v58 }
 0x26d   : > { %v1529_v0 = vpop.eup %1528 }
 0x26e   : > { %v717_v59 = vmul.f32 %v1529_v0, %v1525_v33 }
 0x270   : > { %1343 = vmatmul.mubr.f32.vlgmr.msra.gmra.mrb[2].mxu1 %v717_v59  ;;  %719 = vst [vmem:[%s341_s9 + $0x8] sm:$0xff] %v717_v59 }
 0x271   : > { %1543 = shalt.err (!%p1540_p5)
}
 0x272   : > { %s1544_s27 = scalar_lea.hbm %s1919_s14, 256  ;;  %s1548_s12 = scalar_lea.hbm %s2015_s5, 512 }
 0x273   : > { %p1545_p6 = scmp.ne.s32.totalorder %s1919_s14, %s1544_s27  ;;  %p1549_p10 = scmp.lt.u32.totalorder %s1919_s14, %s2015_s5 }
 0x274   : > { %p1550_p11 = scmp.lt.u32.totalorder %s1548_s12, %s1544_s27  ;;  %p1552_p13 = scmp.lt.u32.totalorder %s1544_s27, %s1919_s14 }
 0x275   : > { %p1546_p7 = pnand %p1545_p6, %p1719_p4 }
 0x276   : > { %p1551_p12 = por %p1550_p11, %p1549_p10 }
 0x277   : > { %p1547_p9 = pneg %p1546_p7 }
 0x278   : > { %p1553_p0 = por %p1552_p13, %p1551_p12 }
 0x27a   : > { %p1554_p1 = pnand %p1553_p0, %p1547_p9 }
 0x27c   : > { %1557 = shalt.err (!%p1554_p1)
}
 0x27d   : > { %s1646_s16 = smov 128   ;;  %s1647_s24 = smov 8  }
 0x27e   : > { %1458 = dma.vmem_to_hbm [thread:$0]  (%p1719_p4), %s1911_s10, 256, %s1919_s14, %s868_s15, %s1646_s16, %s1646_s16, %s1647_s24  }
 0x27f   : > { %s334_s25 = scalar_lea.vmem [#allocation2], %s1081_s8  ;;  %s1958_s12 = scalar_lea.hbm %s2014_s4, %s1135_s11 }
 0x280   : > { %s884_s27 = sshll.u32 %s334_s25, 4  ;;  %s863_s8 = scalar_lea.sflag [#allocation3], %s1906_s7  ;;  %s1951_s27 = int_to_ptr.vmem [resolvable:$true] %s884_s27 }
 0x281   : > { %s1558_s10 = scalar_lea.vmem %s1951_s27, 256  ;;  %s1648_s14 = smov [#allocation2]  }
 0x282   : > { %p1559_p2 = scmp.ne.s32.totalorder %s1951_s27, %s1558_s10  ;;  %s1562_s21 = sshll.u32 %s1648_s14, 4  ;;  %s1563_s21 = int_to_ptr.vmem [resolvable:$false] %s1562_s21 }
 0x283   : > { %s1564_s15 = scalar_lea.vmem %s1563_s21, 512  ;;  %p1565_p6 = scmp.lt.s32.totalorder %s1951_s27, %s1563_s21 }
 0x284   : > { %p1560_p3 = pnand %p1559_p2, %p1719_p4  ;;  %p1566_p7 = scmp.lt.s32.totalorder %s1564_s15, %s1558_s10 }
 0x286   : > { %p1561_p5 = pneg %p1560_p3  ;;  %p1567_p9 = por %p1566_p7, %p1565_p6 }
 0x288   : > { %p1568_p10 = pnand %p1567_p9, %p1561_p5 }
 0x33f   : > { %v786_v60 = vpop.f32.mrb[2].mxu0 }
 0x340   : > { %860 = vst.msk [vmem:[%s334_s25] sm:$0xff] %vm457_vm0, %v786_v60  ;;  %v1309_v61 = vpop.f32.mrb[3].mxu0 }
 0x343   : > { %v856_v62 = vpop.f32.mrb[2].mxu1 }
 0x344   : > { %861 = vst.msk [vmem:[%s334_s25 + $0x8] sm:$0xff] %vm457_vm0, %v856_v62  ;;  %v1344_v63 = vpop.f32.mrb[3].mxu1 }
 0x345   : > { %1571 = shalt.err (!%p1568_p10)
}
 0x346   : > { %s1572_s11 = scalar_lea.hbm %s1958_s12, 256  ;;  %s1576_s25 = scalar_lea.hbm %s2014_s4, 512 }
 0x347   : > { %p1573_p11 = scmp.ne.s32.totalorder %s1958_s12, %s1572_s11  ;;  %p1577_p0 = scmp.lt.u32.totalorder %s1958_s12, %s2014_s4 }
 0x348   : > { %p1578_p1 = scmp.lt.u32.totalorder %s1576_s25, %s1572_s11  ;;  %p1580_p3 = scmp.lt.u32.totalorder %s1572_s11, %s1958_s12 }
 0x349   : > { %p1574_p12 = pnand %p1573_p11, %p1719_p4 }
 0x34a   : > { %p1579_p2 = por %p1578_p1, %p1577_p0 }
 0x34b   : > { %p1575_p13 = pneg %p1574_p12 }
 0x34c   : > { %p1581_p5 = por %p1580_p3, %p1579_p2 }
 0x34e   : > { %p1582_p6 = pnand %p1581_p5, %p1575_p13 }
 0x350   : > { %1585 = shalt.err (!%p1582_p6)
}
 0x351   : > { %1457 = dma.vmem_to_hbm [thread:$0]  (%p1719_p4), %s1951_s27, 256, %s1958_s12, %s863_s8, %s1646_s16, %s1646_s16, %s1647_s24  }
 0x352 PF: > { %p1468_p7 = scmp.ge.s32.totalorder %s1640_s23, 2  ;;  %s918_s10 = sand.u32 1, %s1620_s18  }
 0x353   : > { %s919_s14 = scalar_lea.sflag [#allocation3], %s918_s10 }
 0x354   : > { %p1462_p9 = pnand %p1468_p7, %p1726_p8 }
 0x356   : > { %1611 = dma.done.wait (!%p1462_p9), %s919_s14, 256  }
 0x357   : > { %1613 = vsyncadd (!%p1462_p9), %s919_s14, 4294967040  ;;  %s928_s28 = scalar_lea.sflag [#allocation5], %s918_s10 }
 0x358   : > { %1615 = dma.done.wait (!%p1462_p9), %s928_s28, 256  }
 0x359   : > { %1617 = vsyncadd (!%p1462_p9), %s928_s28, 4294967040  ;;  %s22_s23 = sadd.s32 1, %s1640_s23   ;;  %s2020_s18 = smov %s1624_s19 }
 0x35a   : > { %p19_p10 = scmp.ge.s32.totalorder %s22_s23, 4   ;;  %s2021_s19 = smov %s1628_s20 }
 0x35b   : > { %s2022_s20 = smov %s1732_s6  ;;  %s2023_s21 = smov %s1636_s22 }
 0x35c   : > { %s2024_s22 = smov %s2026_s26  ;;  %21 = sbr.rel (!%p19_p10) target bundleno = 6 (0x6), region = 97 }
 0x363   :  { %933 = vsyncpa [#allocation3], 1 }
 0x364   :  { %935 = vsyncpa [#allocation3 + $0x1], 1 }
 0x365   :  { %936 = vsyncpa [#allocation5], 1 }
 0x366   :  { %938 = vsyncpa [#allocation5 + $0x1], 1 }

</bundles_post_ra>
